<compile_context>
chip_gen: v6e
topology: v6e:2x2x1
jax: 0.10.0
libtpu: 0.0.40
codegen_flags: <defaults>
</compile_context>

<pallas_src>
import jax
import jax.numpy as jnp
from jax.experimental import pallas as pl
from jax.experimental.pallas import tpu as pltpu

EPS = 1e-5  # nn.BatchNorm2d default

_LANE = 128
_TARGET_BLOCK_BYTES = 4 * 1024 * 1024   # per-x-tile target (HBM-roofline sweet spot)
_VMEM_BUDGET_BYTES = 26 * 1024 * 1024   # planned double-buffered footprint ceiling
_VMEM_LIMIT_BYTES = 40 * 1024 * 1024    # explicit scoped-VMEM limit (safe on v5e/v6e/v7x)


def _sublane_granule(dtype):
    # Sub-32-bit dtypes pack along sublanes: (8,128) f32, (16,128) bf16, (32,128) int8.
    return {4: 8, 2: 16, 1: 32}.get(jnp.dtype(dtype).itemsize, 8)


def _bn_act_kernel(scale_ref, shift_ref, x_ref, o_ref):
    # scale/shift: (block_rows, 1) per-row FMA params; x/o: (block_rows, hw_block).
    y = x_ref[...].astype(jnp.float32) * scale_ref[...] + shift_ref[...]
    o_ref[...] = jnp.maximum(y, 0.0).astype(o_ref.dtype)


def _vmem_block_bytes(rb, hb, in_itemsize, out_itemsize):
    """Estimated double-buffered VMEM footprint of one grid step's blocks."""
    lanes = max(hb, _LANE)                     # lane padding inside VMEM
    x_b = rb * lanes * in_itemsize
    o_b = rb * lanes * out_itemsize
    par_b = 2 * rb * _LANE * 4                 # (rb,1) f32 scale + shift, lane padded
    return 2 * (x_b + o_b + par_b)             # x2 for double buffering


def _choose_blocks(ncp, hw, granule, in_itemsize, out_itemsize):
    """Pick (block_rows, hw_block): x tile <= ~4 MiB, double-buffered VMEM within
    budget, and (when possible) >= 4 evenly balanced grid steps for v7x's 2 TCs."""
    if hw % _LANE == 0:
        hw_divs = [d for d in range(_LANE, hw + 1, _LANE) if hw % d == 0]
    else:
        hw_divs = [hw]                         # full-extent lane block
    row_divs = [r for r in range(granule, ncp + 1, granule) if ncp % r == 0]

    best, best_key = None, None
    for hb in hw_divs:
        for rb in row_divs:
            x_bytes = rb * hb * in_itemsize
            vmem = _vmem_block_bytes(rb, hb, in_itemsize, out_itemsize)
            steps = (ncp // rb) * (hw // hb)
            fits = x_bytes <= _TARGET_BLOCK_BYTES and vmem <= _VMEM_BUDGET_BYTES
            key = (
                fits,
                steps >= 4,                    # prefetch/writeback overlap on both cores
                steps % 2 == 0,                # balanced split across 2 TensorCores
                x_bytes if fits else -x_bytes, # largest fitting tile, else smallest
            )
            if best_key is None or key > best_key:
                best, best_key = (rb, hb), key
    return best


def batch_norm_act_2d(x, weight, bias, running_mean, running_var):
    """Eval-mode BatchNorm2d + ReLU on an NCHW tensor via a fused Pallas FMA."""
    N, C, H, W = x.shape
    NC, HW = N * C, H * W

    # Fold BN affine + running stats into per-channel scale/shift (tiny C-length ops).
    inv_std = jax.lax.rsqrt(running_var.astype(jnp.float32) + EPS)
    scale_c = weight.astype(jnp.float32) * inv_std
    shift_c = bias.astype(jnp.float32) - running_mean.astype(jnp.float32) * scale_c

    granule = _sublane_granule(x.dtype)
    pad = (-NC) % granule
    NCp = NC + pad

    x2d = x.reshape(NC, HW)
    if pad:
        # Rare fallback: pad rows to the sublane granule; padded rows get
        # scale=shift=0 -> output 0 -> sliced off below.
        x2d = jnp.pad(x2d, ((0, pad), (0, 0)))

    block_rows, hw_block = _choose_blocks(
        NCp, HW, granule, x.dtype.itemsize, x.dtype.itemsize)
    grid = (NCp // block_rows, HW // hw_block)

    # Per-row (channel) FMA parameters, blocked per grid step.
    if pad == 0 and C % block_rows == 0:
        # Row r = n*C + c -> row block i covers channels starting at (i*block_rows) % C.
        # Index the original (C, 1) columns directly -- no host-side tiling.
        n_cblk = C // block_rows
        scale = scale_c.reshape(C, 1)
        shift = shift_c.reshape(C, 1)
        par_idx = lambda i, j: (i % n_cblk, 0)
    else:
        scale = jnp.tile(scale_c, N).reshape(NC, 1)
        shift = jnp.tile(shift_c, N).reshape(NC, 1)
        if pad:
            scale = jnp.pad(scale, ((0, pad), (0, 0)))
            shift = jnp.pad(shift, ((0, pad), (0, 0)))
        par_idx = lambda i, j: (i, 0)

    par_spec = pl.BlockSpec((block_rows, 1), par_idx)
    row_spec = pl.BlockSpec((block_rows, hw_block), lambda i, j: (i, j))

    itemsize = x.dtype.itemsize
    cost = pl.CostEstimate(
        flops=2 * NC * HW,
        transcendentals=0,
        bytes_accessed=2 * NC * HW * itemsize + 2 * NC * 4,
    )

    out2d = pl.pallas_call(
        _bn_act_kernel,
        out_shape=jax.ShapeDtypeStruct((NCp, HW), x.dtype),
        grid_spec=pltpu.PrefetchScalarGridSpec(
            num_scalar_prefetch=0,
            grid=grid,
            in_specs=[par_spec, par_spec, row_spec],
            out_specs=row_spec,
        ),
        compiler_params=pltpu.CompilerParams(
            # TODO(synk): on v7x, verify "parallel" shards the row axis across
            # both TensorCores; if not, switch to pltpu.CORE_PARALLEL.
            dimension_semantics=("parallel", "parallel"),
            vmem_limit_bytes=_VMEM_LIMIT_BYTES,
        ),
        cost_estimate=cost,
    )(scale, shift, x2d)

    if pad:
        out2d = out2d[:NC]
    return out2d.reshape(N, C, H, W)


def _reference(x, weight, bias, running_mean, running_var):
    # Plain-JAX reference of eval-mode BatchNorm2d + ReLU (NCHW).
    w = weight[None, :, None, None]
    b = bias[None, :, None, None]
    m = running_mean[None, :, None, None]
    v = running_var[None, :, None, None]
    y = (x.astype(jnp.float32) - m) * jax.lax.rsqrt(v + EPS) * w + b
    return jnp.maximum(y, 0.0).astype(x.dtype)


if __name__ == "__main__":
    key = jax.random.PRNGKey(0)
    kx, kw, kb, km, kv = jax.random.split(key, 5)

    N, C, H, W = 2, 4, 16, 16
    x = jax.random.normal(kx, (N, C, H, W), dtype=jnp.float32)

    # Deterministic synthetic BN parameters (shapes from BatchNorm2d(C)).
    weight = jax.random.normal(kw, (C,), dtype=jnp.float32) * 0.1 + 1.0
    bias = jax.random.normal(kb, (C,), dtype=jnp.float32) * 0.1
    running_mean = jax.random.normal(km, (C,), dtype=jnp.float32) * 0.5
    running_var = jax.random.uniform(kv, (C,), dtype=jnp.float32,
                                     minval=0.5, maxval=1.5)

    out = batch_norm_act_2d(x, weight, bias, running_mean, running_var)
    out = jax.block_until_ready(out)

    ref = _reference(x, weight, bias, running_mean, running_var)
    assert out.shape == (N, C, H, W)
    assert jnp.allclose(out, ref, atol=1e-5, rtol=1e-5)

    print("KERNEL_OK")
</pallas_src>

<mosaic_0001>
module attributes {stable_mosaic.version = 11 : i64} {
  func.func @_bn_act_kernel(%arg0: i32, %arg1: i32, %arg2: memref<8x1xf32, #tpu.memory_space<vmem>>, %arg3: memref<8x1xf32, #tpu.memory_space<vmem>>, %arg4: memref<8x128xf32, #tpu.memory_space<vmem>>, %arg5: memref<8x128xf32, #tpu.memory_space<vmem>>) attributes {dimension_semantics = [#tpu.dimension_semantics<parallel>, #tpu.dimension_semantics<parallel>], iteration_bounds = array<i64: 1, 2>, scalar_prefetch = 0 : i64, scratch_operands = 0 : i64, tpu.core_type = #tpu.core_type<tc>, window_params = [{transform_indices = @transform_0, window_bounds = array<i64: 8, 1>}, {transform_indices = @transform_1, window_bounds = array<i64: 8, 1>}, {transform_indices = @transform_2, window_bounds = array<i64: 8, 128>}, {transform_indices = @transform_3, window_bounds = array<i64: 8, 128>}]} {
    %c0 = arith.constant 0 : index
    %c0_0 = arith.constant 0 : index
    %0 = vector.load %arg4[%c0, %c0_0] : memref<8x128xf32, #tpu.memory_space<vmem>>, vector<8x128xf32>
    %c0_1 = arith.constant 0 : index
    %c0_2 = arith.constant 0 : index
    %1 = vector.load %arg2[%c0_1, %c0_2] : memref<8x1xf32, #tpu.memory_space<vmem>>, vector<8x1xf32>
    %2 = vector.broadcast %1 : vector<8x1xf32> to vector<8x128xf32>
    %3 = arith.mulf %0, %2 : vector<8x128xf32>
    %c0_3 = arith.constant 0 : index
    %c0_4 = arith.constant 0 : index
    %4 = vector.load %arg3[%c0_3, %c0_4] : memref<8x1xf32, #tpu.memory_space<vmem>>, vector<8x1xf32>
    %5 = vector.broadcast %4 : vector<8x1xf32> to vector<8x128xf32>
    %6 = arith.addf %3, %5 : vector<8x128xf32>
    %cst = arith.constant 0.000000e+00 : f32
    %7 = vector.broadcast %cst : f32 to vector<8x128xf32>
    %8 = arith.maximumf %6, %7 : vector<8x128xf32>
    %c0_5 = arith.constant 0 : index
    %c0_6 = arith.constant 0 : index
    %9 = vector.load %arg5[%c0_5, %c0_6] : memref<8x128xf32, #tpu.memory_space<vmem>>, vector<8x128xf32>
    tpu.vector_store %arg5[%c0_5, %c0_6], %8 {strides = array<i32>} : memref<8x128xf32, #tpu.memory_space<vmem>>, vector<8x128xf32>,
    return
  }
  func.func @transform_0(%arg0: i32, %arg1: i32) -> (i32, i32) {
    %c0_i32 = arith.constant 0 : i32
    %c0_i32_0 = arith.constant 0 : i32
    return %arg0, %c0_i32 : i32, i32
  }
  func.func @transform_1(%arg0: i32, %arg1: i32) -> (i32, i32) {
    %c0_i32 = arith.constant 0 : i32
    %c0_i32_0 = arith.constant 0 : i32
    return %arg0, %c0_i32 : i32, i32
  }
  func.func @transform_2(%arg0: i32, %arg1: i32) -> (i32, i32) {
    %c0_i32 = arith.constant 0 : i32
    return %arg0, %arg1 : i32, i32
  }
  func.func @transform_3(%arg0: i32, %arg1: i32) -> (i32, i32) {
    %c0_i32 = arith.constant 0 : i32
    return %arg0, %arg1 : i32, i32
  }
}

</mosaic_0001>

<bundles_post_ra>
// kernel: tpu_custom_call.1
= control target key start
LH: loop header
LB: loop body
LE: loop exit
PB: predicated region body
PF: predicated region fallthrough
CT: control target
= control target key end

     0   :  { %8 = vsyncpa [#allocation3], 0  ;;  %s641_s0 = inlined_call_operand.vmem [shape: f32[8,1], index: 0, kind: input, shape index: {}]   ;;  %s642_s1 = inlined_call_operand.vmem [shape: f32[8,1], index: 1, kind: input, shape index: {}]   ;;  %s643_s2 = inlined_call_operand.vmem [shape: f32[8,256], index: 2, kind: input, shape index: {}]   ;;  %s644_s3 = inlined_call_operand.hbm [shape: f32[8,256], index: 3, kind: output, shape index: {}]  }
   0x1   :  { %10 = vsyncpa [#allocation3 + $0x1], 0  ;;  %s536_s12 = smov 0   ;;  %s538_s13 = smov 0  }
   0x2   :  { %s540_s14 = smov 0   ;;  %s542_s15 = smov 0  }
   0x3   :  { %s544_s16 = smov 0   ;;  %s546_s17 = smov 0  }
   0x4 LB: > { %s366_s18 = sadd.s32 4294967295, %s512_s17   ;;  %s367_s19 = sadd.s32 4294967294, %s512_s17   ;;  %s512_s17 = sphi %s546_s17, %s16_s17   ;;  %s508_s16 = sphi %s544_s16, %s651_s16   ;;  %s504_s15 = sphi %s542_s15, %s650_s15   ;;  %s500_s14 = sphi %s540_s14, %s649_s14   ;;  %s496_s13 = sphi %s538_s13, %s648_s13   ;;  %s492_s12 = sphi %s536_s12, %s647_s12  }
   0x5   : > { %s25_s20 = sadd.s32 1, %s508_s16  ;;  %s117_s21 = sadd.s32 1, %s500_s14 }
   0x6   : > { %p26_p0 = scmp.ge.s32.totalorder %s25_s20, 2  ;;  %p127_p1 = scmp.ne.s32.totalorder %s500_s14, %s496_s13 }
   0x7   : > { %p128_p2 = scmp.eq.s32.totalorder %s366_s18, 1  ;;  %p133_p3 = scmp.ne.s32.totalorder %s496_s13, %s492_s12 }
   0x8   : > { %s653_s20 = smov (%p26_p0, %s25_s20), 0  ;;  %p134_p5 = scmp.eq.s32.totalorder %s367_s19, 1 }
   0x9   : > { %p576_p4 = por %p128_p2, %p127_p1  ;;  %s113_s23 = ssub.s32 %s508_s16, %s653_s20 }
   0xa   : > { %p372_p6 = scmp.ge.s32.totalorder %s512_s17, 1  ;;  %p115_p7 = scmp.eq.s32.totalorder %s113_s23, 0 }
   0xb   : > { %p583_p8 = por %p134_p5, %p133_p3  ;;  %p177_p9 = scmp.lt.s32.totalorder %s512_s17, 3 }
   0xc   : > { %s589_s25 = scalar_select %p115_p7, %s500_s14, %s117_s21  }
   0xd   : > { %p178_p10 = pnand %p372_p6, %p177_p9 }
   0xe   : > { %p222_p11 = scmp.lt.s32.totalorder (!%p178_p10), %s504_s15, 1  ;;  %s209_s5 = sand.u32 (!%p178_p10), 1, %s496_s13  }
   0xf   : > { %181 = sbr.rel (%p178_p10) target bundleno = 167 (0xa7), region = 32  ;;  %s373_s9 = sshll.u32 (!%p178_p10), %s209_s5, 3 }
  0x10   : > { %s376_s10 = sshll.u32 (!%p178_p10), %s504_s15, 7  ;;  %s211_s11 = scalar_lea.vmem (!%p178_p10), [#allocation2], %s373_s9 }
  0x11   : > { %s261_s18 = sshll.u32 (!%p178_p10), %s211_s11, 4  ;;  %s259_s23 = scalar_lea.hbm (!%p178_p10), %s644_s3, %s376_s10  ;;  %s262_s18 = int_to_ptr.vmem [resolvable:$true] %s261_s18 }
  0x12   : > { %s246_s26 = scalar_lea.sflag (!%p178_p10), [#allocation3], %s209_s5  ;;  %s436_s27 = scalar_lea.vmem (!%p178_p10), %s262_s18, 128 }
  0x13   : > { %p437_p12 = scmp.ne.s32.totalorder (!%p178_p10), %s262_s18, %s436_s27  ;;  %s515_s28 = smov (!%p178_p10), [#allocation2]  }
  0x14   : > { %v229_v0 = vld [vmem:[%s641_s0] sm:$0xff]  ;;  %v514_v1 = vmov 0   ;;  %s223_s30 = scalar_select %p222_p11, %s504_s15, 1 }
  0x15   : > { %435 = vset.pattern.permute.xlu0 %v514_v1  ;;  %v236_v2 = vld [vmem:[%s642_s1] sm:$0xff]  ;;  %p438_p13 = pnand %p437_p12, %p576_p4  ;;  %s440_s29 = sshll.u32 %s515_s28, 4  ;;  %s441_s29 = int_to_ptr.vmem [resolvable:$false] %s440_s29 }
  0x16   : > { %232 = vperm.xlu0 %435, %v229_v0   ;;  %s374_s4 = sshll.u32 %s223_s30, 3  ;;  %s442_s15 = scalar_lea.vmem %s441_s29, 256 }
  0x17   : > { %s227_s8 = scalar_lea.vmem %s643_s2, %s374_s4  ;;  %p439_p0 = pneg %p438_p13 }
  0x18   : > { %v228_v4 = vld [vmem:[%s227_s8] sm:$0xff]  ;;  %p443_p1 = scmp.lt.s32.totalorder %s262_s18, %s441_s29  ;;  %p444_p2 = scmp.lt.s32.totalorder %s442_s15, %s436_s27 }
  0x1a   : > { %239 = vperm.xlu0 %435, %v236_v2   ;;  %p445_p3 = por %p444_p2, %p443_p1 }
  0x1c   : > { %p446_p5 = pnand %p445_p3, %p439_p0 }
  0x91   : > { %v233_v3 = vpop.permute.xlu0 %232 }
  0x92   : > { %v235_v5 = vmul.f32 %v233_v3, %v228_v4 }
  0x95   : > { %v240_v6 = vpop.permute.xlu0 %239 }
  0x96   : > { %v242_v7 = vadd.f32 %v240_v6, %v235_v5 }
  0x98   : > { %v243_v8 = vmax.f32 %v242_v7, 0.0 }
  0x9a   : > { %244 = vst [vmem:[%s211_s11] sm:$0xff] %v243_v8 }
  0x9b   : > { %449 = shalt.err (!%p446_p5)
}
  0x9c   : > { %s450_s30 = scalar_lea.hbm %s259_s23, 128  ;;  %s454_s6 = scalar_lea.hbm %s644_s3, 256 }
  0x9d   : > { %p451_p6 = scmp.ne.s32.totalorder %s259_s23, %s450_s30  ;;  %p455_p10 = scmp.lt.s32.totalorder %s259_s23, %s644_s3 }
  0x9e   : > { %p456_p11 = scmp.lt.s32.totalorder %s454_s6, %s450_s30 }
  0x9f   : > { %p452_p7 = pnand %p451_p6, %p576_p4 }
  0xa0   : > { %p457_p12 = por %p456_p11, %p455_p10 }
  0xa1   : > { %p453_p9 = pneg %p452_p7 }
  0xa3   : > { %p458_p13 = pnand %p457_p12, %p453_p9 }
  0xa5   : > { %461 = shalt.err (!%p458_p13)
}
  0xa6   : > { %379 = dma.vmem_to_hbm [thread:$0]  (%p576_p4), %s262_s18, 128, %s259_s23, %s246_s26  }
  0xa7 PF: > { %p385_p0 = scmp.ge.s32.totalorder %s512_s17, 2  ;;  %s273_s9 = sand.u32 1, %s492_s12  }
  0xa8   : > { %s274_s10 = scalar_lea.sflag [#allocation3], %s273_s9 }
  0xa9   : > { %p382_p1 = pnand %p385_p0, %p583_p8 }
  0xab   : > { %p383_p2 = pneg %p382_p1 }
  0xad   : > { %487 = dma.done.wait (%p383_p2), %s274_s10, 128  }
  0xae   : > { %489 = vsyncadd (%p383_p2), %s274_s10, 4294967168  ;;  %s16_s17 = sadd.s32 1, %s512_s17   ;;  %s647_s12 = smov %s496_s13 }
  0xaf   : > { %p13_p3 = scmp.ge.s32.totalorder %s16_s17, 4   ;;  %s648_s13 = smov %s500_s14 }
  0xb0   : > { %s649_s14 = smov %s589_s25  ;;  %s650_s15 = smov %s508_s16 }
  0xb1   : > { %s651_s16 = smov %s653_s20  ;;  %15 = sbr.rel (!%p13_p3) target bundleno = 4 (0x4), region = 73 }
  0xb6   :  { %279 = vsyncpa [#allocation3], 1 }
  0xb7   :  { %281 = vsyncpa [#allocation3 + $0x1], 1 }

</bundles_post_ra>
